<compile_context>
chip_gen: v6e
topology: v6e:2x2x1
jax: 0.10.0
libtpu: 0.0.40
codegen_flags: <defaults>
</compile_context>

<pallas_src>
import functools

import jax
import jax.numpy as jnp
from jax.experimental import pallas as pl
from jax.experimental.pallas import tpu as pltpu

H1, H2, H3 = 128, 128, 64


def _round_up(x, m):
    return (x + m - 1) // m * m


def _actor_kernel(x_ref,
                  w1_ref, b1_ref,
                  w2_ref, b2_ref,
                  w3_ref, b3_ref,
                  w4_ref, b4_ref,
                  out_ref):
    wdt = w1_ref.dtype
    x = x_ref[...].astype(wdt)            # cast in-kernel (no wrapper HBM pass)

    h = jnp.dot(x, w1_ref[...], preferred_element_type=jnp.float32) + b1_ref[...]
    h = jnp.maximum(h, 0.0)

    h = jnp.dot(h.astype(wdt), w2_ref[...],
                preferred_element_type=jnp.float32) + b2_ref[...]
    h = jnp.maximum(h, 0.0)

    h = jnp.dot(h.astype(wdt), w3_ref[...],
                preferred_element_type=jnp.float32) + b3_ref[...]
    h = jnp.maximum(h, 0.0)

    act = jnp.dot(h.astype(wdt), w4_ref[...],
                  preferred_element_type=jnp.float32) + b4_ref[...]
    out_ref[...] = act.astype(out_ref.dtype)


def prepare_actor_params(params, *, use_bf16=False):
    """One-time param prep (outside the hot path): reshape biases to (1, N) and
    optionally store weights in bf16.  Biases stay f32 (bias-add/ReLU in f32)."""
    w1, b1, w2, b2, w3, b3, w4, b4 = params
    wdt = jnp.bfloat16 if use_bf16 else jnp.float32
    ws = [jnp.asarray(w, wdt) for w in (w1, w2, w3, w4)]
    bs = [jnp.asarray(b, jnp.float32).reshape(1, -1) for b in (b1, b2, b3, b4)]
    return (ws[0], bs[0], ws[1], bs[1], ws[2], bs[2], ws[3], bs[3])


@functools.partial(jax.jit, static_argnames=("block_b",))
def _actor_forward_impl(obs, prepared_params, *, block_b=4096):
    obs = jnp.asarray(obs).astype(jnp.float32)   # mirrors torch.as_tensor(..., float32)
    w1, b1, w2, b2, w3, b3, w4, b4 = prepared_params

    B, D = obs.shape
    A = w4.shape[1]

    # --- batch tiling (all Python/static arithmetic) ---
    block_b = max(8, _round_up(block_b, 8))      # defensive: multiple of 8
    Bp8 = _round_up(B, 8)
    TB = min(block_b, Bp8)
    # Give the "parallel" grid axis >= 2 tiles for large batches so v7x's two
    # TensorCores both get work (harmless elsewhere: one extra ~0.35us step).
    if Bp8 // TB < 2 and Bp8 > 256:
        TB = _round_up(-(-Bp8 // 2), 8)
    Bp = _round_up(B, TB)

    if Bp != B:
        obs = jnp.pad(obs, ((0, Bp - B), (0, 0)))   # row pad only (tiny)

    grid = (Bp // TB,)

    def resident(shape):
        # Constant index_map -> DMA'd once, stays VMEM-resident across tiles.
        return pl.BlockSpec(shape, lambda i: (0, 0))

    weight_bytes = sum(int(p.size) * p.dtype.itemsize for p in prepared_params)
    cost = pl.CostEstimate(
        flops=2 * Bp * (D * H1 + H1 * H2 + H2 * H3 + H3 * A),
        transcendentals=0,
        bytes_accessed=Bp * D * 4 + Bp * A * 4 + weight_bytes,
    )

    act = pl.pallas_call(
        _actor_kernel,
        out_shape=jax.ShapeDtypeStruct((Bp, A), jnp.float32),
        grid=grid,
        in_specs=[
            pl.BlockSpec((TB, D), lambda i: (i, 0)),   # obs tile, native D (streamed)
            resident(w1.shape), resident(b1.shape),    # W1 (D,128),  b1
            resident(w2.shape), resident(b2.shape),    # W2 (128,128), b2
            resident(w3.shape), resident(b3.shape),    # W3 (128,64),  b3
            resident(w4.shape), resident(b4.shape),    # W4 (64,A),    b4
        ],
        out_specs=pl.BlockSpec((TB, A), lambda i: (i, 0)),   # direct (B, A) output
        compiler_params=pltpu.CompilerParams(
            dimension_semantics=("parallel",)),
        cost_estimate=cost,
    )(obs, w1, b1, w2, b2, w3, b3, w4, b4)

    return act[:B] if Bp != B else act


def actor_forward(obs, prepared_params, state=None, *, block_b=4096):
    """Pallas equivalent of Actor.forward. Returns (act_n, state)."""
    act_n = _actor_forward_impl(obs, prepared_params, block_b=block_b)
    return act_n, state


def init_actor_params(key, state_dim, action_dim):
    """Deterministic init mirroring nn.Linear's default U(-1/sqrt(fan_in), ...)."""
    dims = [(state_dim, H1), (H1, H2), (H2, H3), (H3, action_dim)]
    params = []
    for (fan_in, fan_out) in dims:
        key, kw, kb = jax.random.split(key, 3)
        bound = 1.0 / jnp.sqrt(fan_in)
        w = jax.random.uniform(kw, (fan_in, fan_out), jnp.float32, -bound, bound)
        b = jax.random.uniform(kb, (1, fan_out), jnp.float32, -bound, bound)
        params += [w, b]
    return tuple(params)


def actor_reference(obs, params):
    """Pure-JAX reference for correctness checking."""
    w1, b1, w2, b2, w3, b3, w4, b4 = params
    h = jnp.maximum(obs @ w1 + b1, 0.0)
    h = jnp.maximum(h @ w2 + b2, 0.0)
    h = jnp.maximum(h @ w3 + b3, 0.0)
    return h @ w4 + b4


if __name__ == "__main__":
    STATE_DIM, ACTION_DIM = 16, 4

    key = jax.random.PRNGKey(0)
    k_obs, k_obs2, k_params = jax.random.split(key, 3)
    params = init_actor_params(k_params, STATE_DIM, ACTION_DIM)

    # One-time param prep (outside the hot path).
    prep_f32 = prepare_actor_params(params, use_bf16=False)
    prep_bf16 = prepare_actor_params(params, use_bf16=True)

    # --- small batch (single tile), f32 path ---
    B = 8
    obs = jax.random.normal(k_obs, (B, STATE_DIM), dtype=jnp.float32)
    act_n, state = actor_forward(obs, prep_f32, state=None)
    act_n = jax.block_until_ready(act_n)
    ref = actor_reference(obs, params)
    assert act_n.shape == (B, ACTION_DIM)
    assert jnp.allclose(act_n, ref, atol=1e-5, rtol=1e-5), "f32 mismatch vs reference"
    assert state is None

    # --- larger batch exercising the tiled grid (2 tiles) + row padding ---
    B2 = 600
    obs2 = jax.random.normal(k_obs2, (B2, STATE_DIM), dtype=jnp.float32)
    act2, _ = actor_forward(obs2, prep_f32, state=None)
    act2 = jax.block_until_ready(act2)
    ref2 = actor_reference(obs2, params)
    assert act2.shape == (B2, ACTION_DIM)
    assert jnp.allclose(act2, ref2, atol=1e-5, rtol=1e-5), "tiled f32 mismatch"

    # --- bf16-weight MXU path (obs cast happens inside the kernel), looser tol ---
    act_bf16, _ = actor_forward(obs2, prep_bf16, state=None)
    act_bf16 = jax.block_until_ready(act_bf16)
    assert jnp.allclose(act_bf16, ref2, atol=5e-2, rtol=5e-2), "bf16 mismatch"

    # TODO(synk): norm_layer / flatten_input variants of the PyTorch module are
    # not exercised (reference config uses norm_layer=None, flatten_input=False).

    print("KERNEL_OK")
</pallas_src>

<mosaic_0001>
module attributes {stable_mosaic.version = 11 : i64} {
  func.func @_actor_kernel(%arg0: i32, %arg1: memref<8x16xf32, #tpu.memory_space<vmem>>, %arg2: memref<16x128xf32, #tpu.memory_space<vmem>>, %arg3: memref<1x128xf32, #tpu.memory_space<vmem>>, %arg4: memref<128x128xf32, #tpu.memory_space<vmem>>, %arg5: memref<1x128xf32, #tpu.memory_space<vmem>>, %arg6: memref<128x64xf32, #tpu.memory_space<vmem>>, %arg7: memref<1x64xf32, #tpu.memory_space<vmem>>, %arg8: memref<64x4xf32, #tpu.memory_space<vmem>>, %arg9: memref<1x4xf32, #tpu.memory_space<vmem>>, %arg10: memref<8x4xf32, #tpu.memory_space<vmem>>) attributes {dimension_semantics = [#tpu.dimension_semantics<parallel>], iteration_bounds = array<i64: 1>, scalar_prefetch = 0 : i64, scratch_operands = 0 : i64, tpu.core_type = #tpu.core_type<tc>, window_params = [{transform_indices = @transform_0, window_bounds = array<i64: 8, 16>}, {pipeline_mode = #tpu.pipeline_mode<synchronous>, transform_indices = @transform_1, window_bounds = array<i64: 16, 128>}, {pipeline_mode = #tpu.pipeline_mode<synchronous>, transform_indices = @transform_2, window_bounds = array<i64: 1, 128>}, {pipeline_mode = #tpu.pipeline_mode<synchronous>, transform_indices = @transform_3, window_bounds = array<i64: 128, 128>}, {pipeline_mode = #tpu.pipeline_mode<synchronous>, transform_indices = @transform_4, window_bounds = array<i64: 1, 128>}, {pipeline_mode = #tpu.pipeline_mode<synchronous>, transform_indices = @transform_5, window_bounds = array<i64: 128, 64>}, {pipeline_mode = #tpu.pipeline_mode<synchronous>, transform_indices = @transform_6, window_bounds = array<i64: 1, 64>}, {pipeline_mode = #tpu.pipeline_mode<synchronous>, transform_indices = @transform_7, window_bounds = array<i64: 64, 4>}, {pipeline_mode = #tpu.pipeline_mode<synchronous>, transform_indices = @transform_8, window_bounds = array<i64: 1, 4>}, {transform_indices = @transform_9, window_bounds = array<i64: 8, 4>}]} {
    %c0 = arith.constant 0 : index
    %c0_0 = arith.constant 0 : index
    %0 = vector.load %arg1[%c0, %c0_0] : memref<8x16xf32, #tpu.memory_space<vmem>>, vector<8x16xf32>
    %c0_1 = arith.constant 0 : index
    %c0_2 = arith.constant 0 : index
    %1 = vector.load %arg2[%c0_1, %c0_2] : memref<16x128xf32, #tpu.memory_space<vmem>>, vector<16x128xf32>
    %cst = arith.constant dense<0.000000e+00> : vector<8x128xf32>
    %2 = tpu.matmul %0, %1, %cst {dimension_numbers = #tpu.dot_dimension_numbers<[1], [0], [0], [1], [0, 0, 1, 1], [], []>} : vector<8x16xf32>, vector<16x128xf32>, vector<8x128xf32> -> vector<8x128xf32>
    %c0_3 = arith.constant 0 : index
    %c0_4 = arith.constant 0 : index
    %3 = vector.load %arg3[%c0_3, %c0_4] : memref<1x128xf32, #tpu.memory_space<vmem>>, vector<1x128xf32>
    %4 = vector.broadcast %3 : vector<1x128xf32> to vector<8x128xf32>
    %5 = arith.addf %2, %4 : vector<8x128xf32>
    %cst_5 = arith.constant 0.000000e+00 : f32
    %6 = vector.broadcast %cst_5 : f32 to vector<8x128xf32>
    %7 = arith.maximumf %5, %6 : vector<8x128xf32>
    %c0_6 = arith.constant 0 : index
    %c0_7 = arith.constant 0 : index
    %8 = vector.load %arg4[%c0_6, %c0_7] : memref<128x128xf32, #tpu.memory_space<vmem>>, vector<128x128xf32>
    %cst_8 = arith.constant dense<0.000000e+00> : vector<8x128xf32>
    %9 = tpu.matmul %7, %8, %cst_8 {dimension_numbers = #tpu.dot_dimension_numbers<[1], [0], [0], [1], [0, 0, 1, 1], [], []>} : vector<8x128xf32>, vector<128x128xf32>, vector<8x128xf32> -> vector<8x128xf32>
    %c0_9 = arith.constant 0 : index
    %c0_10 = arith.constant 0 : index
    %10 = vector.load %arg5[%c0_9, %c0_10] : memref<1x128xf32, #tpu.memory_space<vmem>>, vector<1x128xf32>
    %11 = vector.broadcast %10 : vector<1x128xf32> to vector<8x128xf32>
    %12 = arith.addf %9, %11 : vector<8x128xf32>
    %cst_11 = arith.constant 0.000000e+00 : f32
    %13 = vector.broadcast %cst_11 : f32 to vector<8x128xf32>
    %14 = arith.maximumf %12, %13 : vector<8x128xf32>
    %c0_12 = arith.constant 0 : index
    %c0_13 = arith.constant 0 : index
    %15 = vector.load %arg6[%c0_12, %c0_13] : memref<128x64xf32, #tpu.memory_space<vmem>>, vector<128x64xf32>
    %cst_14 = arith.constant dense<0.000000e+00> : vector<8x64xf32>
    %16 = tpu.matmul %14, %15, %cst_14 {dimension_numbers = #tpu.dot_dimension_numbers<[1], [0], [0], [1], [0, 0, 1, 1], [], []>} : vector<8x128xf32>, vector<128x64xf32>, vector<8x64xf32> -> vector<8x64xf32>
    %c0_15 = arith.constant 0 : index
    %c0_16 = arith.constant 0 : index
    %17 = vector.load %arg7[%c0_15, %c0_16] : memref<1x64xf32, #tpu.memory_space<vmem>>, vector<1x64xf32>
    %18 = vector.broadcast %17 : vector<1x64xf32> to vector<8x64xf32>
    %19 = arith.addf %16, %18 : vector<8x64xf32>
    %cst_17 = arith.constant 0.000000e+00 : f32
    %20 = vector.broadcast %cst_17 : f32 to vector<8x64xf32>
    %21 = arith.maximumf %19, %20 : vector<8x64xf32>
    %c0_18 = arith.constant 0 : index
    %c0_19 = arith.constant 0 : index
    %22 = vector.load %arg8[%c0_18, %c0_19] : memref<64x4xf32, #tpu.memory_space<vmem>>, vector<64x4xf32>
    %cst_20 = arith.constant dense<0.000000e+00> : vector<8x4xf32>
    %23 = tpu.matmul %21, %22, %cst_20 {dimension_numbers = #tpu.dot_dimension_numbers<[1], [0], [0], [1], [0, 0, 1, 1], [], []>} : vector<8x64xf32>, vector<64x4xf32>, vector<8x4xf32> -> vector<8x4xf32>
    %c0_21 = arith.constant 0 : index
    %c0_22 = arith.constant 0 : index
    %24 = vector.load %arg9[%c0_21, %c0_22] : memref<1x4xf32, #tpu.memory_space<vmem>>, vector<1x4xf32>
    %25 = vector.broadcast %24 : vector<1x4xf32> to vector<8x4xf32>
    %26 = arith.addf %23, %25 : vector<8x4xf32>
    %c0_23 = arith.constant 0 : index
    %c0_24 = arith.constant 0 : index
    %27 = vector.load %arg10[%c0_23, %c0_24] : memref<8x4xf32, #tpu.memory_space<vmem>>, vector<8x4xf32>
    tpu.vector_store %arg10[%c0_23, %c0_24], %26 {strides = array<i32>} : memref<8x4xf32, #tpu.memory_space<vmem>>, vector<8x4xf32>,
    return
  }
  func.func @transform_0(%arg0: i32) -> (i32, i32) {
    %c0_i32 = arith.constant 0 : i32
    %c0_i32_0 = arith.constant 0 : i32
    return %arg0, %c0_i32 : i32, i32
  }
  func.func @transform_1(%arg0: i32) -> (i32, i32) {
    %c0_i32 = arith.constant 0 : i32
    %c0_i32_0 = arith.constant 0 : i32
    %c0_i32_1 = arith.constant 0 : i32
    return %c0_i32, %c0_i32_0 : i32, i32
  }
  func.func @transform_2(%arg0: i32) -> (i32, i32) {
    %c0_i32 = arith.constant 0 : i32
    %c0_i32_0 = arith.constant 0 : i32
    %c0_i32_1 = arith.constant 0 : i32
    return %c0_i32, %c0_i32_0 : i32, i32
  }
  func.func @transform_3(%arg0: i32) -> (i32, i32) {
    %c0_i32 = arith.constant 0 : i32
    %c0_i32_0 = arith.constant 0 : i32
    %c0_i32_1 = arith.constant 0 : i32
    return %c0_i32, %c0_i32_0 : i32, i32
  }
  func.func @transform_4(%arg0: i32) -> (i32, i32) {
    %c0_i32 = arith.constant 0 : i32
    %c0_i32_0 = arith.constant 0 : i32
    %c0_i32_1 = arith.constant 0 : i32
    return %c0_i32, %c0_i32_0 : i32, i32
  }
  func.func @transform_5(%arg0: i32) -> (i32, i32) {
    %c0_i32 = arith.constant 0 : i32
    %c0_i32_0 = arith.constant 0 : i32
    %c0_i32_1 = arith.constant 0 : i32
    return %c0_i32, %c0_i32_0 : i32, i32
  }
  func.func @transform_6(%arg0: i32) -> (i32, i32) {
    %c0_i32 = arith.constant 0 : i32
    %c0_i32_0 = arith.constant 0 : i32
    %c0_i32_1 = arith.constant 0 : i32
    return %c0_i32, %c0_i32_0 : i32, i32
  }
  func.func @transform_7(%arg0: i32) -> (i32, i32) {
    %c0_i32 = arith.constant 0 : i32
    %c0_i32_0 = arith.constant 0 : i32
    %c0_i32_1 = arith.constant 0 : i32
    return %c0_i32, %c0_i32_0 : i32, i32
  }
  func.func @transform_8(%arg0: i32) -> (i32, i32) {
    %c0_i32 = arith.constant 0 : i32
    %c0_i32_0 = arith.constant 0 : i32
    %c0_i32_1 = arith.constant 0 : i32
    return %c0_i32, %c0_i32_0 : i32, i32
  }
  func.func @transform_9(%arg0: i32) -> (i32, i32) {
    %c0_i32 = arith.constant 0 : i32
    %c0_i32_0 = arith.constant 0 : i32
    return %arg0, %c0_i32 : i32, i32
  }
}

</mosaic_0001>

<bundles_post_ra>
// kernel: _actor_forward_impl.1
= control target key start
LH: loop header
LB: loop body
LE: loop exit
PB: predicated region body
PF: predicated region fallthrough
CT: control target
= control target key end

     0   :  { %v550_v0 = vmov 0.0   ;;  %vm551_vm0 = vmmov 0   ;;  %vm42_vm1 = vcmask 130048   ;;  %vm320_vm2 = vcmask 523264   ;;  %s796_s1 = inlined_call_operand.vmem [shape: f32[16,128], index: 1, kind: input, shape index: {}]   ;;  %s797_s0 = inlined_call_operand.vmem [shape: f32[8,16], index: 0, kind: input, shape index: {}]   ;;  %s798_s3 = inlined_call_operand.vmem [shape: f32[128,128], index: 3, kind: input, shape index: {}]   ;;  %s799_s5 = inlined_call_operand.vmem [shape: f32[128,64], index: 5, kind: input, shape index: {}]   ;;  %s800_s2 = inlined_call_operand.vmem [shape: f32[1,128], index: 2, kind: input, shape index: {}]   ;;  %s801_s7 = inlined_call_operand.vmem [shape: f32[64,4], index: 7, kind: input, shape index: {}]   ;;  %s802_s4 = inlined_call_operand.vmem [shape: f32[1,128], index: 4, kind: input, shape index: {}]   ;;  %s803_s6 = inlined_call_operand.vmem [shape: f32[1,64], index: 6, kind: input, shape index: {}]   ;;  %s804_s8 = inlined_call_operand.vmem [shape: f32[1,4], index: 8, kind: input, shape index: {}]   ;;  %s805_s9 = inlined_call_operand.vmem [shape: f32[8,4], index: 9, kind: output, shape index: {}]  }
   0x1   :  { %452 = vmatprep.subr.mxu0 %v550_v0  ;;  %v34_v1 = vld [vmem:[%s796_s1 + $0x8] sm:$0xff]  ;;  %v33_v2 = vld [vmem:[%s796_s1] sm:$0xff]  ;;  %456 = vmatprep.mubr.msk.f32.mxu0 %vm551_vm0, %v550_v0  ;;  %v132_v4 = vld [vmem:[%s798_s3 + $0x78] sm:$0xff]  ;;  %vm394_vm3 = vcmask 31744  }
   0x2   :  { %453 = vmatpush3.msra.mxu0 %v34_v1  ;;  %v32_v3 = vld [vmem:[%s797_s0] sm:$0xff]  ;;  %459 = vmatprep.subr.mxu1 %v550_v0  ;;  %v131_v5 = vld [vmem:[%s798_s3 + $0x70] sm:$0xff]  ;;  %v130_v6 = vld [vmem:[%s798_s3 + $0x68] sm:$0xff] }
   0x3   :  { %454 = vmatprep.subr.mxu0 %v550_v0  ;;  %460 = vmatpush3.msra.mxu1 %v132_v4  ;;  %v129_v7 = vld [vmem:[%s798_s3 + $0x60] sm:$0xff]  ;;  %v128_v8 = vld [vmem:[%s798_s3 + $0x58] sm:$0xff]  ;;  %v127_v9 = vld [vmem:[%s798_s3 + $0x50] sm:$0xff] }
   0x4   :  { %455 = vmatpush3.msra.mxu0 %v33_v2  ;;  %461 = vmatprep.subr.mxu1 %v550_v0  ;;  %v126_v10 = vld [vmem:[%s798_s3 + $0x48] sm:$0xff]  ;;  %v125_v11 = vld [vmem:[%s798_s3 + $0x40] sm:$0xff]  ;;  %v124_v12 = vld [vmem:[%s798_s3 + $0x38] sm:$0xff] }
   0x5   :  { %457 = vmatmul.mubr.msk.f32.vlgmr.msra.gmra.mxu0 %vm42_vm1, %v32_v3  ;;  %462 = vmatpush3.msra.mxu1 %v131_v5  ;;  %v123_v13 = vld [vmem:[%s798_s3 + $0x30] sm:$0xff]  ;;  %v122_v14 = vld [vmem:[%s798_s3 + $0x28] sm:$0xff]  ;;  %v121_v15 = vld [vmem:[%s798_s3 + $0x20] sm:$0xff] }
   0x6   :  { %463 = vmatprep.subr.mxu1 %v550_v0  ;;  %491 = vmatprep.mubr.msk.f32.mxu1 %vm551_vm0, %v550_v0  ;;  %v120_v16 = vld [vmem:[%s798_s3 + $0x18] sm:$0xff]  ;;  %v119_v17 = vld [vmem:[%s798_s3 + $0x10] sm:$0xff]  ;;  %v118_v18 = vld [vmem:[%s798_s3 + $0x8] sm:$0xff] }
   0x7   :  { %464 = vmatpush3.msra.mxu1 %v130_v6  ;;  %494 = vmatprep.subr.mxu0 %v550_v0  ;;  %v117_v19 = vld [vmem:[%s798_s3] sm:$0xff]  ;;  %v226_v20 = vld [vmem:[%s799_s5 + $0x78] sm:$0xff]  ;;  %v225_v21 = vld [vmem:[%s799_s5 + $0x70] sm:$0xff] }
   0x8   :  { %465 = vmatprep.subr.mxu1 %v550_v0  ;;  %526 = vmatprep.mubr.msk.f32.mxu0 %vm551_vm0, %v550_v0  ;;  %v224_v22 = vld [vmem:[%s799_s5 + $0x68] sm:$0xff]  ;;  %v223_v23 = vld [vmem:[%s799_s5 + $0x60] sm:$0xff]  ;;  %v222_v24 = vld [vmem:[%s799_s5 + $0x58] sm:$0xff] }
   0x9   :  { %466 = vmatpush3.msra.mxu1 %v129_v7  ;;  %495 = vmatpush3.msra.mxu0 %v226_v20  ;;  %v221_v25 = vld [vmem:[%s799_s5 + $0x50] sm:$0xff]  ;;  %v220_v26 = vld [vmem:[%s799_s5 + $0x48] sm:$0xff]  ;;  %v219_v27 = vld [vmem:[%s799_s5 + $0x40] sm:$0xff] }
   0xa   :  { %467 = vmatprep.subr.mxu1 %v550_v0  ;;  %496 = vmatprep.subr.mxu0 %v550_v0  ;;  %v218_v28 = vld [vmem:[%s799_s5 + $0x38] sm:$0xff]  ;;  %v217_v29 = vld [vmem:[%s799_s5 + $0x30] sm:$0xff]  ;;  %v216_v30 = vld [vmem:[%s799_s5 + $0x28] sm:$0xff] }
   0xb   :  { %468 = vmatpush3.msra.mxu1 %v128_v8  ;;  %497 = vmatpush3.msra.mxu0 %v225_v21  ;;  %v215_v31 = vld [vmem:[%s799_s5 + $0x20] sm:$0xff]  ;;  %v214_v32 = vld [vmem:[%s799_s5 + $0x18] sm:$0xff]  ;;  %v213_v38 = vld [vmem:[%s799_s5 + $0x10] sm:$0xff] }
   0xc   :  { %469 = vmatprep.subr.mxu1 %v550_v0  ;;  %498 = vmatprep.subr.mxu0 %v550_v0  ;;  %v400_v33 = vld [vmem:[%s800_s2] ss:$0 sm:$0xff]  ;;  %v212_v39 = vld [vmem:[%s799_s5 + $0x8] sm:$0xff]  ;;  %v312_v41 = vld [vmem:[%s801_s7 + $0x38] sm:$0xff] }
   0xd   :  { %470 = vmatpush3.msra.mxu1 %v127_v9  ;;  %499 = vmatpush3.msra.mxu0 %v224_v22  ;;  %v211_v40 = vld [vmem:[%s799_s5] sm:$0xff]  ;;  %v311_v42 = vld [vmem:[%s801_s7 + $0x30] sm:$0xff]  ;;  %v310_v43 = vld [vmem:[%s801_s7 + $0x28] sm:$0xff] }
   0xe   :  { %471 = vmatprep.subr.mxu1 %v550_v0  ;;  %500 = vmatprep.subr.mxu0 %v550_v0  ;;  %v309_v44 = vld [vmem:[%s801_s7 + $0x20] sm:$0xff]  ;;  %v308_v45 = vld [vmem:[%s801_s7 + $0x18] sm:$0xff]  ;;  %v307_v51 = vld [vmem:[%s801_s7 + $0x10] sm:$0xff] }
   0xf   :  { %472 = vmatpush3.msra.mxu1 %v126_v10  ;;  %501 = vmatpush3.msra.mxu0 %v223_v23  ;;  %v402_v46 = vld [vmem:[%s802_s4] ss:$0 sm:$0xff]  ;;  %v306_v52 = vld [vmem:[%s801_s7 + $0x8] sm:$0xff] }
  0x10   :  { %473 = vmatprep.subr.mxu1 %v550_v0  ;;  %502 = vmatprep.subr.mxu0 %v550_v0  ;;  %v305_v53 = vld [vmem:[%s801_s7] sm:$0xff] }
  0x11   :  { %474 = vmatpush3.msra.mxu1 %v125_v11  ;;  %503 = vmatpush3.msra.mxu0 %v222_v24  ;;  %v403_v54 = vld [vmem:[%s803_s6] ss:$0 sm:$0xff] }
  0x12   :  { %475 = vmatprep.subr.mxu1 %v550_v0  ;;  %504 = vmatprep.subr.mxu0 %v550_v0  ;;  %v404_v59 = vld [vmem:[%s804_s8] ss:$0 sm:$0xff] }
  0x13   :  { %476 = vmatpush3.msra.mxu1 %v124_v12  ;;  %505 = vmatpush3.msra.mxu0 %v221_v25 }
  0x14   :  { %477 = vmatprep.subr.mxu1 %v550_v0  ;;  %506 = vmatprep.subr.mxu0 %v550_v0 }
  0x15   :  { %478 = vmatpush3.msra.mxu1 %v123_v13  ;;  %507 = vmatpush3.msra.mxu0 %v220_v26 }
  0x16   :  { %479 = vmatprep.subr.mxu1 %v550_v0  ;;  %508 = vmatprep.subr.mxu0 %v550_v0 }
  0x17   :  { %480 = vmatpush3.msra.mxu1 %v122_v14  ;;  %509 = vmatpush3.msra.mxu0 %v219_v27 }
  0x18   :  { %481 = vmatprep.subr.mxu1 %v550_v0  ;;  %510 = vmatprep.subr.mxu0 %v550_v0 }
  0x19   :  { %482 = vmatpush3.msra.mxu1 %v121_v15  ;;  %511 = vmatpush3.msra.mxu0 %v218_v28 }
  0x1a   :  { %483 = vmatprep.subr.mxu1 %v550_v0  ;;  %512 = vmatprep.subr.mxu0 %v550_v0 }
  0x1b   :  { %484 = vmatpush3.msra.mxu1 %v120_v16  ;;  %513 = vmatpush3.msra.mxu0 %v217_v29 }
  0x1c   :  { %485 = vmatprep.subr.mxu1 %v550_v0  ;;  %514 = vmatprep.subr.mxu0 %v550_v0 }
  0x1d   :  { %486 = vmatpush3.msra.mxu1 %v119_v17  ;;  %515 = vmatpush3.msra.mxu0 %v216_v30 }
  0x1e   :  { %487 = vmatprep.subr.mxu1 %v550_v0  ;;  %516 = vmatprep.subr.mxu0 %v550_v0 }
  0x1f   :  { %488 = vmatpush3.msra.mxu1 %v118_v18  ;;  %517 = vmatpush3.msra.mxu0 %v215_v31 }
  0x20   :  { %489 = vmatprep.subr.mxu1 %v550_v0  ;;  %518 = vmatprep.subr.mxu0 %v550_v0 }
  0x21   :  { %490 = vmatpush3.msra.mxu1 %v117_v19  ;;  %519 = vmatpush3.msra.mxu0 %v214_v32 }
  0x22   :  { %529 = vmatprep.subr.mxu1 %v550_v0  ;;  %520 = vmatprep.subr.mxu0 %v550_v0 }
  0x23   :  { %521 = vmatpush3.msra.mxu0 %v213_v38 }
  0x24   :  { %522 = vmatprep.subr.mxu0 %v550_v0 }
  0x25   :  { %523 = vmatpush3.msra.mxu0 %v212_v39 }
  0x26   :  { %524 = vmatprep.subr.mxu0 %v550_v0 }
  0x27   :  { %525 = vmatpush3.msra.mxu0 %v211_v40 }
  0xc5   :  { %v112_v34 = vpop.f32.mrf.mxu0 }
  0xc6   :  { %v113_v35 = vadd.f32 %v400_v33, %v112_v34 }
  0xc7   :  { %v458_v36 = vpop.f32.mrf.mxu0 }
  0xc8   :  { %v116_v37 = vmax.f32 %v113_v35, 0.0 }
  0xca   :  { %492 = vmatmul.mubr.f32.vlgmr.msra.gmra.mxu1 %v116_v37 }
  0xcb   :  { %545 = vmatprep.mubr.msk.f32.mxu1 %vm551_vm0, %v550_v0  ;;  %530 = vmatpush3.msra.mxu1 %v312_v41 }
  0xcc   :  { %531 = vmatprep.subr.mxu1 %v550_v0 }
  0xcd   :  { %532 = vmatpush3.msra.mxu1 %v311_v42 }
  0xce   :  { %533 = vmatprep.subr.mxu1 %v550_v0 }
  0xcf   :  { %534 = vmatpush3.msra.mxu1 %v310_v43 }
  0xd0   :  { %535 = vmatprep.subr.mxu1 %v550_v0 }
  0xd1   :  { %536 = vmatpush3.msra.mxu1 %v309_v44 }
  0xd2   :  { %537 = vmatprep.subr.mxu1 %v550_v0 }
  0xd3   :  { %538 = vmatpush3.msra.mxu1 %v308_v45 }
  0xd4   :  { %539 = vmatprep.subr.mxu1 %v550_v0 }
  0xd5   :  { %540 = vmatpush3.msra.mxu1 %v307_v51 }
  0xd6   :  { %541 = vmatprep.subr.mxu1 %v550_v0 }
  0xd7   :  { %542 = vmatpush3.msra.mxu1 %v306_v52 }
  0xd8   :  { %543 = vmatprep.subr.mxu1 %v550_v0 }
  0xd9   :  { %544 = vmatpush3.msra.mxu1 %v305_v53 }
 0x18a   :  { %v206_v47 = vpop.f32.mrf.mxu1 }
 0x18b   :  { %v207_v48 = vadd.f32 %v402_v46, %v206_v47 }
 0x18c   :  { %v493_v49 = vpop.f32.mrf.mxu1 }
 0x18d   :  { %v210_v50 = vmax.f32 %v207_v48, 0.0 }
 0x18f   :  { %527 = vmatmul.mubr.f32.vlgmr.msra.gmra.mxu0 %v210_v50 }
 0x24f   :  { %v300_v55 = vpop.f32.mrf.mxu0 }
 0x250   :  { %v301_v56 = vadd.f32 %v403_v54, %v300_v55 }
 0x251   :  { %v528_v57 = vpop.f32.mrf.mxu0 }
 0x252   :  { %v304_v58 = vmax.f32 %v301_v56, 0.0 }
 0x254   :  { %546 = vmatmul.mubr.msk.f32.vlgmr.msra.gmra.mxu1 %vm320_vm2, %v304_v58 }
 0x314   :  { %v390_v60 = vpop.f32.mrf.mxu1 }
 0x315   :  { %v391_v61 = vadd.f32 %v404_v59, %v390_v60 }
 0x316   :  { %v547_v62 = vpop.f32.mrf.mxu1 }
 0x317   :  { %395 = vst.msk [vmem:[%s805_s9] sm:$0xff] %vm394_vm3, %v391_v61 }

</bundles_post_ra>
